<compile_context>
chip_gen: v7x
topology: tpu7x:2x2x1
jax: 0.10.0
libtpu: 0.0.40
codegen_flags: <defaults>
</compile_context>

<pallas_src>
import math
import functools

import jax
import jax.numpy as jnp
from jax.experimental import pallas as pl
from jax.experimental.pallas import tpu as pltpu


_VMEM_LIMIT = 48 * 1024 * 1024   # <= v7x physical (64 MiB), ample on v5e/v6e
_SEQ_ALIGN = 128                 # pad long non-aligned sequences to this
_SEQ_FULL_BLOCK_MAX = 512        # below this, a full-length block always fits


# ----------------------------------------------------------------------------
# Tiling helpers
# ----------------------------------------------------------------------------
def _pick_tile(dim, target, align):
    """Largest multiple of `align` that divides `dim`, capped at `target`.
    If dim <= target the full dimension is used (block == extent is always
    legal, and the wrappers below pad long sequences so this fallback can
    never produce a VMEM-busting block)."""
    if dim <= target:
        return dim
    t = (target // align) * align
    while t >= align:
        if dim % t == 0:
            return t
        t -= align
    return dim


def _padded_len(n):
    if n <= _SEQ_FULL_BLOCK_MAX or n % _SEQ_ALIGN == 0:
        return n
    return ((n + _SEQ_ALIGN - 1) // _SEQ_ALIGN) * _SEQ_ALIGN


def _pad_axis(x, axis, new_size):
    if x.shape[axis] == new_size:
        return x
    cfg = [(0, 0)] * x.ndim
    cfg[axis] = (0, new_size - x.shape[axis])
    return jnp.pad(x, cfg)


# ----------------------------------------------------------------------------
# Kernel 1: per-head Q/K/V projection.
#   x (B, n, d_model) bf16 @ w (G, d_model, d_k) bf16 (+ b (G,1,d_k) f32)
#   -> out (B, G, n, d_k) bf16, written directly in head-major layout.
# The grid is (B, n/tm, G) with G innermost, so the x block stays resident in
# VMEM across all G output groups (no re-fetch).
# ----------------------------------------------------------------------------
def head_proj_kernel(x_ref, w_ref, b_ref, o_ref):
    o_ref[0, 0] = (
        jnp.dot(x_ref[0], w_ref[0], preferred_element_type=jnp.float32)
        + b_ref[0]
    ).astype(o_ref.dtype)


def head_projection(x, w, b, *, tm_target=512):
    B, n, d_model = x.shape
    G, _, d_k = w.shape
    tm = _pick_tile(n, tm_target, 16)
    grid = (B, n // tm, G)

    return pl.pallas_call(
        head_proj_kernel,
        out_shape=jax.ShapeDtypeStruct((B, G, n, d_k), jnp.bfloat16),
        grid_spec=pltpu.PrefetchScalarGridSpec(
            num_scalar_prefetch=0,
            grid=grid,
            in_specs=[
                pl.BlockSpec((1, tm, d_model), lambda bb, i, g: (bb, i, 0)),
                pl.BlockSpec((1, d_model, d_k), lambda bb, i, g: (g, 0, 0)),
                pl.BlockSpec((1, 1, d_k), lambda bb, i, g: (g, 0, 0)),
            ],
            out_specs=pl.BlockSpec((1, 1, tm, d_k),
                                   lambda bb, i, g: (bb, g, i, 0)),
        ),
        compiler_params=pltpu.CompilerParams(
            dimension_semantics=("parallel", "parallel", "parallel"),
            vmem_limit_bytes=_VMEM_LIMIT,
        ),
    )(x, w, b)


# ----------------------------------------------------------------------------
# Kernel 2: flash attention, all heads per grid step, KV tiles on the grid.
#   q/k/v blocks (1, h, t, d_k) bf16; optional mask block (1, tq, tk) int8.
#   Running max/sum/accumulator scratch in f32; output bf16 (B, h, n, d_k).
# ----------------------------------------------------------------------------
def _make_flash_kernel(has_mask, kv_tail, nk_valid, tk):
    def kernel(q_ref, k_ref, v_ref, *rest):
        if has_mask:
            mask_ref, o_ref, m_sc, l_sc, acc_sc = rest
        else:
            o_ref, m_sc, l_sc, acc_sc = rest

        ki = pl.program_id(2)

        @pl.when(ki == 0)
        def _():
            m_sc[...] = jnp.full_like(m_sc, -jnp.inf)
            l_sc[...] = jnp.zeros_like(l_sc)
            acc_sc[...] = jnp.zeros_like(acc_sc)

        # 1/sqrt(d_k) is already folded into the Q projection weights.
        # Contraction over the last dims -> MXU-native, no K relayout needed.
        s = jnp.einsum("hqd,hkd->hqk", q_ref[0], k_ref[0],
                       preferred_element_type=jnp.float32)     # (h, tq, tk) f32

        if has_mask:
            msk = mask_ref[0]                                  # (tq, tk) int8
            s = jnp.where(msk[None, :, :] == 0, jnp.float32(-1e9), s)
        if kv_tail:
            # Mask KV positions introduced only by sequence padding.
            col = jax.lax.broadcasted_iota(jnp.int32, (1, 1, tk), 2) + ki * tk
            s = jnp.where(col < nk_valid, s, jnp.float32(-1e9))

        m_prev = m_sc[...]
        m_new = jnp.maximum(m_prev, jnp.max(s, axis=-1, keepdims=True))
        alpha = jnp.exp(m_prev - m_new)
        p = jnp.exp(s - m_new)                                 # f32 (see TODO)
        l_sc[...] = alpha * l_sc[...] + jnp.sum(p, axis=-1, keepdims=True)
        acc_sc[...] = alpha * acc_sc[...] + jnp.einsum(
            "hqk,hkd->hqd", p.astype(v_ref.dtype), v_ref[0],
            preferred_element_type=jnp.float32)
        m_sc[...] = m_new

        @pl.when(ki == pl.num_programs(2) - 1)
        def _():
            l = l_sc[...]
            inv = pl.reciprocal(l, approx=True)      # EUP slot
            inv = inv * (2.0 - l * inv)              # one Newton step
            o_ref[0] = (acc_sc[...] * inv).astype(o_ref.dtype)

    return kernel


def pallas_flash_attention(q_arr, k_arr, v_arr, q_blk, k_blk, v_blk, mask_i8,
                           *, h, nk_valid, tq_target=256, tk_target=512):
    """q/k/v arrays: (B, G*, n*, d_k) bf16 head-major (possibly the same fused
    array); *_blk select the head group (in blocks of h) along axis 1."""
    B, _, nq, d_k = q_arr.shape
    nk = k_arr.shape[2]
    has_mask = mask_i8 is not None
    kv_tail = (nk_valid < nk) and not has_mask

    tq = _pick_tile(nq, tq_target, 32 if has_mask else 16)
    tk = _pick_tile(nk, tk_target, 128)
    grid = (B, nq // tq, nk // tk)

    in_specs = [
        pl.BlockSpec((1, h, tq, d_k), lambda b, qi, ki, g=q_blk: (b, g, qi, 0)),
        pl.BlockSpec((1, h, tk, d_k), lambda b, qi, ki, g=k_blk: (b, g, ki, 0)),
        pl.BlockSpec((1, h, tk, d_k), lambda b, qi, ki, g=v_blk: (b, g, ki, 0)),
    ]
    args = [q_arr, k_arr, v_arr]
    if has_mask:
        bm = mask_i8.shape[0]
        m_map = (lambda b, qi, ki: (b, qi, ki)) if bm > 1 else \
                (lambda b, qi, ki: (0, qi, ki))
        in_specs.append(pl.BlockSpec((1, tq, tk), m_map))
        args.append(mask_i8)

    kernel = _make_flash_kernel(has_mask, kv_tail, nk_valid, tk)
    return pl.pallas_call(
        kernel,
        out_shape=jax.ShapeDtypeStruct((B, h, nq, d_k), jnp.bfloat16),
        grid_spec=pltpu.PrefetchScalarGridSpec(
            num_scalar_prefetch=0,
            grid=grid,
            in_specs=in_specs,
            out_specs=pl.BlockSpec((1, h, tq, d_k),
                                   lambda b, qi, ki: (b, 0, qi, 0)),
            scratch_shapes=[
                pltpu.VMEM((h, tq, 1), jnp.float32),    # running max
                pltpu.VMEM((h, tq, 1), jnp.float32),    # running sum
                pltpu.VMEM((h, tq, d_k), jnp.float32),  # accumulator
            ],
        ),
        compiler_params=pltpu.CompilerParams(
            dimension_semantics=("parallel", "parallel", "arbitrary"),
            vmem_limit_bytes=_VMEM_LIMIT,
        ),
    )(*args)


# ----------------------------------------------------------------------------
# Kernel 3: output projection with the head axis as a reduction grid axis.
#   x (B, h, n, d_k) bf16, wo (h, d_k, d_model) bf16, bo (1, d_model) f32
#   -> (B, n, d_model) f32.  No HBM transpose of the attention output; the
#   head merge happens in the f32 accumulator (per-step contraction depth is
#   d_k, an accepted trade-off vs. a full activation transpose in HBM).
# ----------------------------------------------------------------------------
def out_proj_kernel(x_ref, w_ref, b_ref, o_ref, acc_ref):
    hh = pl.program_id(2)

    @pl.when(hh == 0)
    def _():
        acc_ref[...] = jnp.zeros_like(acc_ref)

    acc_ref[...] += jnp.dot(x_ref[0, 0], w_ref[0],
                            preferred_element_type=jnp.float32)

    @pl.when(hh == pl.num_programs(2) - 1)
    def _():
        o_ref[0] = (acc_ref[...] + b_ref[...]).astype(o_ref.dtype)


def pallas_out_projection(x, w, b, *, tm_target=256):
    B, h, n, d_k = x.shape
    d_model = w.shape[2]
    tm = _pick_tile(n, tm_target, 16)
    grid = (B, n // tm, h)

    return pl.pallas_call(
        out_proj_kernel,
        out_shape=jax.ShapeDtypeStruct((B, n, d_model), jnp.float32),
        grid_spec=pltpu.PrefetchScalarGridSpec(
            num_scalar_prefetch=0,
            grid=grid,
            in_specs=[
                pl.BlockSpec((1, 1, tm, d_k), lambda bb, i, hh: (bb, hh, i, 0)),
                pl.BlockSpec((1, d_k, d_model), lambda bb, i, hh: (hh, 0, 0)),
                pl.BlockSpec((1, d_model), lambda bb, i, hh: (0, 0)),
            ],
            out_specs=pl.BlockSpec((1, tm, d_model),
                                   lambda bb, i, hh: (bb, i, 0)),
            scratch_shapes=[pltpu.VMEM((tm, d_model), jnp.float32)],
        ),
        compiler_params=pltpu.CompilerParams(
            dimension_semantics=("parallel", "parallel", "arbitrary"),
            vmem_limit_bytes=_VMEM_LIMIT,
        ),
    )(x, w, b)


# ----------------------------------------------------------------------------
# MultiHeadedAttention forward (glue in plain JAX, hot paths in Pallas)
# ----------------------------------------------------------------------------
def multi_headed_attention(params, query, key, value, mask=None, *, h):
    """params: wq,bq,wk,bk,wv,bv,wo,bo with w* shaped (d_model, d_model) used
    as x @ w + b.  query: (B, nq, d_model); key/value: (B, nk, d_model).
    Returns (B, nq, d_model) float32."""
    B, nq, d_model = query.shape
    nk = key.shape[1]
    d_k = d_model // h
    scale = 1.0 / math.sqrt(d_k)

    # ---- weight packing: per-head layout, bf16, scale folded into Q ----
    def per_head(w, b, s=1.0):
        wh = (w * s).reshape(d_model, h, d_k).transpose(1, 0, 2)  # (h, dm, d_k)
        bh = (b * s).reshape(h, 1, d_k)
        return wh.astype(jnp.bfloat16), bh.astype(jnp.float32)

    wq, bq = per_head(params["wq"], params["bq"], scale)
    wk, bk = per_head(params["wk"], params["bk"])
    wv, bv = per_head(params["wv"], params["bv"])
    wo = params["wo"].reshape(h, d_k, d_model).astype(jnp.bfloat16)
    bo = params["bo"].reshape(1, d_model).astype(jnp.float32)

    # ---- pad non-aligned sequence lengths once (tail masked in-kernel) ----
    nq_p, nk_p = _padded_len(nq), _padded_len(nk)

    # ---- projections (fused when tensors are shared) ----
    x_q = _pad_axis(query.astype(jnp.bfloat16), 1, nq_p)
    if (query is key) and (key is value):
        wqkv = jnp.concatenate([wq, wk, wv], axis=0)
        bqkv = jnp.concatenate([bq, bk, bv], axis=0)
        qkv = head_projection(x_q, wqkv, bqkv)        # (B, 3h, nq_p, d_k)
        q_arr = k_arr = v_arr = qkv
        q_blk, k_blk, v_blk = 0, 1, 2
        nk_p = nq_p
    elif key is value:
        x_kv = _pad_axis(key.astype(jnp.bfloat16), 1, nk_p)
        q_arr = head_projection(x_q, wq, bq)          # (B, h, nq_p, d_k)
        kv = head_projection(x_kv,
                             jnp.concatenate([wk, wv], axis=0),
                             jnp.concatenate([bk, bv], axis=0))
        k_arr = v_arr = kv                            # (B, 2h, nk_p, d_k)
        q_blk, k_blk, v_blk = 0, 0, 1
    else:
        x_k = _pad_axis(key.astype(jnp.bfloat16), 1, nk_p)
        x_v = _pad_axis(value.astype(jnp.bfloat16), 1, nk_p)
        q_arr = head_projection(x_q, wq, bq)
        k_arr = head_projection(x_k, wk, bk)
        v_arr = head_projection(x_v, wv, bv)
        q_blk = k_blk = v_blk = 0

    # ---- mask (int8, only when provided) ----
    if mask is None:
        mask_i8 = None
    else:
        m = mask
        if m.ndim == 2:
            m = m[None]
        if m.ndim == 4:
            m = m[:, 0]
        m = jnp.broadcast_to(m != 0, (m.shape[0], nq, nk)).astype(jnp.int8)
        m = _pad_axis(_pad_axis(m, 1, nq_p), 2, nk_p)   # padded positions -> 0
        mask_i8 = m

    # ---- attention + output projection ----
    attn = pallas_flash_attention(q_arr, k_arr, v_arr, q_blk, k_blk, v_blk,
                                  mask_i8, h=h, nk_valid=nk)   # (B,h,nq_p,d_k)
    out = pallas_out_projection(attn, wo, bo)                  # (B,nq_p,dm)
    return out[:, :nq] if nq_p != nq else out


# ----------------------------------------------------------------------------
# Reference (plain JAX, float32) for sanity checking
# ----------------------------------------------------------------------------
def reference_mha(params, query, key, value, mask, *, h):
    B, nq, d_model = query.shape
    d_k = d_model // h

    def proj(x, w, b):
        y = x @ w + b
        return y.reshape(B, x.shape[1], h, d_k).transpose(0, 2, 1, 3)

    q = proj(query, params["wq"], params["bq"])
    k = proj(key, params["wk"], params["bk"])
    v = proj(value, params["wv"], params["bv"])
    scores = jnp.einsum("bhqd,bhkd->bhqk", q, k) / math.sqrt(d_k)
    if mask is not None:
        m = mask
        if m.ndim == 2:
            m = m[None]
        scores = jnp.where(m[:, None, :, :] == 0, -1e9, scores)
    p = jax.nn.softmax(scores, axis=-1)
    x = jnp.einsum("bhqk,bhkd->bhqd", p, v)
    x = x.transpose(0, 2, 1, 3).reshape(B, nq, d_model)
    return x @ params["wo"] + params["bo"]


if __name__ == "__main__":
    B, n, d_model, h = 2, 8, 32, 4
    nk_cross = 16

    key0 = jax.random.PRNGKey(0)
    ks = jax.random.split(key0, 12)
    bound = 1.0 / math.sqrt(d_model)

    params = {
        "wq": jax.random.uniform(ks[0], (d_model, d_model), jnp.float32, -bound, bound),
        "bq": jax.random.uniform(ks[1], (d_model,), jnp.float32, -bound, bound),
        "wk": jax.random.uniform(ks[2], (d_model, d_model), jnp.float32, -bound, bound),
        "bk": jax.random.uniform(ks[3], (d_model,), jnp.float32, -bound, bound),
        "wv": jax.random.uniform(ks[4], (d_model, d_model), jnp.float32, -bound, bound),
        "bv": jax.random.uniform(ks[5], (d_model,), jnp.float32, -bound, bound),
        "wo": jax.random.uniform(ks[6], (d_model, d_model), jnp.float32, -bound, bound),
        "bo": jax.random.uniform(ks[7], (d_model,), jnp.float32, -bound, bound),
    }

    x_in = jax.random.normal(ks[8], (B, n, d_model), jnp.float32)
    q_in = jax.random.normal(ks[9], (B, n, d_model), jnp.float32)
    k_in = jax.random.normal(ks[10], (B, nk_cross, d_model), jnp.float32)
    v_in = jax.random.normal(ks[11], (B, nk_cross, d_model), jnp.float32)

    TOL = dict(atol=3e-2, rtol=3e-2)   # bf16 operands vs. f32 reference

    # 1) Self-attention (fused QKV projection) with a causal mask (B, n, n).
    causal = jnp.tril(jnp.ones((n, n), jnp.float32))
    mask = jnp.broadcast_to(causal, (B, n, n))
    out1 = jax.block_until_ready(
        multi_headed_attention(params, x_in, x_in, x_in, mask, h=h))
    ref1 = reference_mha(params, x_in, x_in, x_in, mask, h=h)
    assert out1.shape == (B, n, d_model)
    assert jnp.allclose(out1, ref1, **TOL), "self-attn mismatch vs reference"

    # 2) Cross-attention, distinct q/k/v, different KV length, no mask.
    out2 = jax.block_until_ready(
        multi_headed_attention(params, q_in, k_in, v_in, None, h=h))
    ref2 = reference_mha(params, q_in, k_in, v_in, None, h=h)
    assert jnp.allclose(out2, ref2, **TOL), "cross-attn mismatch vs reference"

    # 3) Cross-attention with key is value (fused KV projection) + a padding
    #    mask that disables the last 4 KV positions (shape (B, n, nk_cross)).
    kv_mask = jnp.concatenate(
        [jnp.ones((B, n, nk_cross - 4), jnp.float32),
         jnp.zeros((B, n, 4), jnp.float32)], axis=-1)
    out3 = jax.block_until_ready(
        multi_headed_attention(params, q_in, k_in, k_in, kv_mask, h=h))
    ref3 = reference_mha(params, q_in, k_in, k_in, kv_mask, h=h)
    assert jnp.allclose(out3, ref3, **TOL), "kv-fused attn mismatch vs reference"

    print("KERNEL_OK")
</pallas_src>

<mosaic_0001>
module attributes {stable_mosaic.version = 11 : i64} {
  func.func @head_proj_kernel(%arg0: i32, %arg1: i32, %arg2: i32, %arg3: memref<1x8x32xbf16, #tpu.memory_space<vmem>>, %arg4: memref<1x32x8xbf16, #tpu.memory_space<vmem>>, %arg5: memref<1x1x8xf32, #tpu.memory_space<vmem>>, %arg6: memref<1x1x8x8xbf16, #tpu.memory_space<vmem>>) attributes {dimension_semantics = [#tpu.dimension_semantics<parallel>, #tpu.dimension_semantics<parallel>, #tpu.dimension_semantics<parallel>], iteration_bounds = array<i64: 2, 1, 12>, scalar_prefetch = 0 : i64, scratch_operands = 0 : i64, tpu.core_type = #tpu.core_type<tc>, window_params = [{transform_indices = @transform_0, window_bounds = array<i64: 1, 8, 32>}, {transform_indices = @transform_1, window_bounds = array<i64: 1, 32, 8>}, {transform_indices = @transform_2, window_bounds = array<i64: 1, 1, 8>}, {transform_indices = @transform_3, window_bounds = array<i64: 1, 1, 8, 8>}]} {
    %c0 = arith.constant 0 : index
    %c0_0 = arith.constant 0 : index
    %c0_1 = arith.constant 0 : index
    %0 = vector.load %arg3[%c0, %c0_0, %c0_1] : memref<1x8x32xbf16, #tpu.memory_space<vmem>>, vector<1x8x32xbf16>
    %1 = vector.shape_cast %0 : vector<1x8x32xbf16> to vector<8x32xbf16>
    %c0_2 = arith.constant 0 : index
    %c0_3 = arith.constant 0 : index
    %c0_4 = arith.constant 0 : index
    %2 = vector.load %arg4[%c0_2, %c0_3, %c0_4] : memref<1x32x8xbf16, #tpu.memory_space<vmem>>, vector<1x32x8xbf16>
    %3 = vector.shape_cast %2 : vector<1x32x8xbf16> to vector<32x8xbf16>
    %cst = arith.constant dense<0.000000e+00> : vector<8x8xf32>
    %4 = tpu.matmul %1, %3, %cst {dimension_numbers = #tpu.dot_dimension_numbers<[1], [0], [0], [1], [0, 0, 1, 1], [], []>} : vector<8x32xbf16>, vector<32x8xbf16>, vector<8x8xf32> -> vector<8x8xf32>
    %c0_5 = arith.constant 0 : index
    %c0_6 = arith.constant 0 : index
    %c0_7 = arith.constant 0 : index
    %5 = vector.load %arg5[%c0_5, %c0_6, %c0_7] : memref<1x1x8xf32, #tpu.memory_space<vmem>>, vector<1x1x8xf32>
    %6 = vector.shape_cast %5 : vector<1x1x8xf32> to vector<1x8xf32>
    %7 = vector.broadcast %6 : vector<1x8xf32> to vector<8x8xf32>
    %8 = arith.addf %4, %7 : vector<8x8xf32>
    %9 = arith.truncf %8 : vector<8x8xf32> to vector<8x8xbf16>
    %c0_8 = arith.constant 0 : index
    %c0_9 = arith.constant 0 : index
    %c0_10 = arith.constant 0 : index
    %c0_11 = arith.constant 0 : index
    %10 = vector.load %arg6[%c0_8, %c0_9, %c0_10, %c0_11] : memref<1x1x8x8xbf16, #tpu.memory_space<vmem>>, vector<1x1x8x8xbf16>
    %11 = vector.shape_cast %10 : vector<1x1x8x8xbf16> to vector<8x8xbf16>
    %12 = vector.shape_cast %9 : vector<8x8xbf16> to vector<1x1x8x8xbf16>
    tpu.vector_store %arg6[%c0_8, %c0_9, %c0_10, %c0_11], %12 {strides = array<i32>} : memref<1x1x8x8xbf16, #tpu.memory_space<vmem>>, vector<1x1x8x8xbf16>,
    return
  }
  func.func @transform_0(%arg0: i32, %arg1: i32, %arg2: i32) -> (i32, i32, i32) {
    %c0_i32 = arith.constant 0 : i32
    %c0_i32_0 = arith.constant 0 : i32
    return %arg0, %arg1, %c0_i32 : i32, i32, i32
  }
  func.func @transform_1(%arg0: i32, %arg1: i32, %arg2: i32) -> (i32, i32, i32) {
    %c0_i32 = arith.constant 0 : i32
    %c0_i32_0 = arith.constant 0 : i32
    %c0_i32_1 = arith.constant 0 : i32
    return %arg2, %c0_i32, %c0_i32_0 : i32, i32, i32
  }
  func.func @transform_2(%arg0: i32, %arg1: i32, %arg2: i32) -> (i32, i32, i32) {
    %c0_i32 = arith.constant 0 : i32
    %c0_i32_0 = arith.constant 0 : i32
    %c0_i32_1 = arith.constant 0 : i32
    return %arg2, %c0_i32, %c0_i32_0 : i32, i32, i32
  }
  func.func @transform_3(%arg0: i32, %arg1: i32, %arg2: i32) -> (i32, i32, i32, i32) {
    %c0_i32 = arith.constant 0 : i32
    %c0_i32_0 = arith.constant 0 : i32
    return %arg0, %arg2, %arg1, %c0_i32 : i32, i32, i32, i32
  }
}

</mosaic_0001>

<bundles_post_ra>
// kernel: tpu_custom_call.1
= control target key start
LH: loop header
LB: loop body
LE: loop exit
PB: predicated region body
PF: predicated region fallthrough
CT: control target
= control target key end

     0   :  { %s571_s12 = smov 0   ;;  %s573_s13 = smov 0   ;;  %s628_s0 = inlined_call_operand.vmem [shape: bf16[2,8,32], index: 0, kind: input, shape index: {}]   ;;  %s629_s1 = inlined_call_operand.vmem [shape: bf16[12,32,8], index: 1, kind: input, shape index: {}]   ;;  %s630_s2 = inlined_call_operand.vmem [shape: f32[12,1,8], index: 2, kind: input, shape index: {}]   ;;  %s631_s3 = inlined_call_operand.vmem [shape: bf16[2,12,8,8], index: 3, kind: output, shape index: {}]  }
   0x1   :  { %s575_s14 = smov 0   ;;  %s577_s15 = smov 0  }
   0x2   :  { %s579_s16 = smov 0  }
   0x3 LB: > { %s25_s17 = sadd.s32 1, %s539_s14  ;;  %s32_s18 = sadd.s32 1, %s543_s15  ;;  %s547_s16 = sphi %s579_s16, %s13_s16   ;;  %s543_s15 = sphi %s577_s15, %s635_s15   ;;  %s539_s14 = sphi %s575_s14, %s634_s14   ;;  %s535_s13 = sphi %s573_s13, %s633_s13   ;;  %s531_s12 = sphi %s571_s12, %s632_s12  }
   0x4   : > { %p26_p0 = scmp.ge.s32.totalorder %s25_s17, 12  ;;  %p441_p1 = scmp.ge.s32.totalorder %s547_s16, 1 }
   0x5   : > { %p182_p2 = scmp.lt.s32.totalorder %s547_s16, 25 }
   0x6   : > { %s637_s17 = smov (%p26_p0, %s25_s17), 0  ;;  %s639_s18 = smov (!%p26_p0, %s32_s18), %s543_s15 }
   0x7   : > { %p183_p3 = pnand %p441_p1, %p182_p2  ;;  %p34_p4 = scmp.ge.s32.totalorder %s639_s18, 2 }
   0x8   : > { %p229_p5 = scmp.lt.s32.totalorder (!%p183_p3), %s531_s12, 11  ;;  %p222_p6 = scmp.lt.s32.totalorder (!%p183_p3), %s535_s13, 1  ;;  %v549_v0 = vmov (!%p183_p3), 0.0   ;;  %vm550_vm0 = vmmov (!%p183_p3), 0   ;;  %vm273_vm1 = vcmask (!%p183_p3), 261120   ;;  %vm318_vm2 = vcmask (!%p183_p3), 60416  }
   0x9   : > { %s641_s18 = smov (%p34_p4, %s639_s18), 0  ;;  %186 = sbr.rel (%p183_p3) target bundleno = 244 (0xf4), region = 32 }
   0xa   : > { %456 = vmatprep.subr.bf16.mxu0 (!%p183_p3), %v549_v0  ;;  %460 = vmatprep.mubr.msk.bf16.mxu0 (!%p183_p3), %vm550_vm0, %v549_v0 }
  0x10   : > { %s643_s12 = smov (!%p229_p5, %s531_s12), 11  ;;  %s645_s13 = smov (!%p222_p6, %s535_s13), 1 }
  0x11   : > { %s452_s19 = sshll.u32 %s643_s12, 4  ;;  %s442_s23 = sshll.u32 %s645_s13, 2 }
  0x12   : > { %s233_s22 = scalar_lea.vmem %s629_s1, %s452_s19  ;;  %s464_s24 = smul.u32 12, %s645_s13 }
  0x13   : > { %v507_v1 = vld [vmem:[%s233_s22] sm:$0xff]   ;;  %v508_v2 = vld [vmem:[%s233_s22 + $0x8] sm:$0xff]   ;;  %s228_s28 = scalar_lea.vmem %s628_s0, %s442_s23  ;;  %s236_s4 = scalar_lea.vmem %s630_s2, %s643_s12 }
  0x14   : > { %457 = vmatpush3.bf16.msra.mxu0 %v507_v1  ;;  %s245_s25 = sadd.s32 %s464_s24, %s643_s12  ;;  %v249_v3 = vld [vmem:[%s228_s28] sm:$0xf] }
  0x15   : > { %458 = vmatprep.subr.bf16.mxu0 %v549_v0  ;;  %v446_v4 = vld [vmem:[%s236_s4] ss:$0 sm:$0xff]  ;;  %s445_s5 = sshll.u32 %s245_s25, 2 }
  0x16   : > { %s247_s8 = scalar_lea.vmem %s631_s3, %s445_s5 }
  0x18   : > { %459 = vmatpush3.bf16.msra.mxu0 %v508_v2 }
  0x1b   : > { %461 = vmatmul.mubr.msk.bf16.vlgmr.msra.gmra.mrb[0].mxu0 %vm273_vm1, %v249_v3 }
  0xee   : > { %v311_v5 = vpop.f32.mrb[0].mxu0 }
  0xef   : > { %v312_v6 = vadd.f32 %v446_v4, %v311_v5  ;;  %v462_v7 = vpop.f32.mrb[1].mxu0 }
  0xf0   : > { %v314_v8 = vpop.f32.mrb[2].mxu0 }
  0xf1   : > { %v317_v9 = vpack.c.bf16 %v312_v6, %v312_v6  ;;  %v463_v10 = vpop.f32.mrb[3].mxu0 }
  0xf3   : > { %319 = vst.msk [vmem:[%s247_s8] sm:$0xf] %vm318_vm2, %v317_v9 }
  0xf4 PF: > { %s13_s16 = sadd.s32 1, %s547_s16   ;;  %s632_s12 = smov %s539_s14 }
  0xf5   : > { %p10_p7 = scmp.ge.s32.totalorder %s13_s16, 26   ;;  %s633_s13 = smov %s543_s15 }
  0xf6   : > { %s634_s14 = smov %s637_s17  ;;  %s635_s15 = smov %s641_s18 }
  0xf7   :  { %12 = sbr.rel (!%p10_p7) target bundleno = 3 (0x3), region = 68 }

</bundles_post_ra>
